<compile_context>
chip_gen: v7x
topology: tpu7x:2x2x1
jax: 0.10.0
libtpu: 0.0.40
codegen_flags: <defaults>
</compile_context>

<pallas_src>
import jax
import jax.numpy as jnp
from jax.experimental import pallas as pl
from jax.experimental.pallas import tpu as pltpu

LAYER_SIZES = [32, 64, 32]
PAD = 128                 # vreg lane width: every feature dim padded to this
DEFAULT_BATCH_TILE = 256  # rows per grid step (multiple of 8; tiny VMEM footprint)


def _round_up(x, m):
    return (x + m - 1) // m * m


def _make_qn_kernel(n_layers):
    def kernel(x_ref, w_ref, b_ref, o_ref):
        # x_ref : (bt, 128)            bf16 activations (lane-dense)
        # w_ref : (n_layers*128, 128)  bf16 packed weights, one 128x128 slab per layer
        # b_ref : (8, 128)             f32  packed biases (row k = layer k)
        # o_ref : (bt, 128)            f32  output (sliced to num_actions outside)
        h = x_ref[...]                                    # bf16 MXU operand
        act = None
        for k in range(n_layers):                         # static unroll (4 layers)
            w = w_ref[pl.ds(k * PAD, PAD), :]             # (128,128) bf16, static slice
            b = b_ref[pl.ds(k, 1), :]                     # (1,128)   f32, static slice
            acc = jnp.dot(h, w, preferred_element_type=jnp.float32)  # MXU, f32 accum
            act = jnp.maximum(acc + b, 0.0)               # f32 bias + ReLU (every layer)
            h = act.astype(jnp.bfloat16)                  # bf16 operand for next matmul
        o_ref[...] = act                                  # unmasked, lane-dense store
    return kernel


def pack_params(params):
    """Pack per-layer (W (in,out), b (1,out)) into one bf16 weight slab and one
    f32 bias slab, zero-padded so every layer is a lane-dense 128x128 matmul."""
    n = len(params)
    w_pack = jnp.zeros((n * PAD, PAD), jnp.float32)
    b_pack = jnp.zeros((_round_up(n, 8), PAD), jnp.float32)
    for k, (w, b) in enumerate(params):
        fin, fout = w.shape
        assert fin <= PAD and fout <= PAD
        w_pack = w_pack.at[k * PAD:k * PAD + fin, :fout].set(w)
        b_pack = b_pack.at[k, :fout].set(jnp.reshape(b, (-1,)))
    return w_pack.astype(jnp.bfloat16), b_pack  # biases stay f32


def qn_forward(x, params, *, batch_tile=None):
    """x: (B, num_states) f32. params: list of (W (in,out), b (1,out)) f32."""
    B, num_states = x.shape
    num_actions = params[-1][0].shape[1]
    n_layers = len(params)

    w_pack, b_pack = pack_params(params)

    if batch_tile is None:
        batch_tile = DEFAULT_BATCH_TILE if B >= DEFAULT_BATCH_TILE else _round_up(B, 8)
    assert batch_tile % 8 == 0, "batch_tile must be a multiple of 8 (sublane tiling)"
    B_pad = _round_up(B, batch_tile)

    # Zero-pad features to 128 lanes and batch to a tile multiple; bf16 MXU operand.
    x_p = jnp.zeros((B_pad, PAD), jnp.float32).at[:B, :num_states].set(x)
    x_p = x_p.astype(jnp.bfloat16)

    out = pl.pallas_call(
        _make_qn_kernel(n_layers),
        out_shape=jax.ShapeDtypeStruct((B_pad, PAD), jnp.float32),
        grid_spec=pltpu.PrefetchScalarGridSpec(
            num_scalar_prefetch=0,
            grid=(B_pad // batch_tile,),
            in_specs=[
                # activations: tiled over batch, double-buffered by the pipeline
                pl.BlockSpec((batch_tile, PAD), lambda i: (i, 0)),
                # packed params: full array, constant index_map -> resident in
                # VMEM, not re-DMA'd across grid steps (~131 KiB total).
                pl.BlockSpec(w_pack.shape, lambda i: (0, 0)),
                pl.BlockSpec(b_pack.shape, lambda i: (0, 0)),
            ],
            out_specs=pl.BlockSpec((batch_tile, PAD), lambda i: (i, 0)),
        ),
        compiler_params=pltpu.CompilerParams(
            # batch grid is embarrassingly parallel -> shard across v7x's 2 TCs
            dimension_semantics=("parallel",)),
    )(x_p, w_pack, b_pack)

    # Padded rows/columns are sliced off here (padded cols are exactly zero).
    return out[:B, :num_actions]


def init_params(num_states, num_actions, key):
    """Deterministic init matching nn.Linear shapes: W_pt (out,in) -> stored as (in,out)."""
    dims = [num_states] + LAYER_SIZES + [num_actions]
    params = []
    for i in range(len(dims) - 1):
        fan_in, fan_out = dims[i], dims[i + 1]
        key, kw, kb = jax.random.split(key, 3)
        bound = 1.0 / jnp.sqrt(fan_in)
        w = jax.random.uniform(kw, (fan_in, fan_out), jnp.float32, -bound, bound)
        b = jax.random.uniform(kb, (1, fan_out), jnp.float32, -bound, bound)
        params.append((w, b))
    return params


def qn_reference(x, params):
    h = x
    for w, b in params:
        h = jnp.maximum(h @ w + b, 0.0)
    return h


if __name__ == "__main__":
    num_states, num_actions, batch = 16, 8, 20   # batch not a tile multiple on purpose
    key = jax.random.PRNGKey(0)
    key, kx = jax.random.split(key)
    x = jax.random.normal(kx, (batch, num_states), jnp.float32)
    params = init_params(num_states, num_actions, key)

    # Small batch_tile so the demo exercises a multi-step grid + batch padding.
    out = qn_forward(x, params, batch_tile=16)
    out = jax.block_until_ready(out)

    ref = qn_reference(x, params)  # pure f32 reference
    assert out.shape == (batch, num_actions)
    # bf16 matmul operands w/ f32 accumulation: allow ~1% relative error.
    assert jnp.allclose(out, ref, atol=5e-2, rtol=5e-2), (
        f"max abs diff {jnp.max(jnp.abs(out - ref))}")
    print("KERNEL_OK")
</pallas_src>

<mosaic_0001>
module attributes {stable_mosaic.version = 11 : i64} {
  func.func @kernel(%arg0: i32, %arg1: memref<16x128xbf16, #tpu.memory_space<vmem>>, %arg2: memref<512x128xbf16, #tpu.memory_space<vmem>>, %arg3: memref<8x128xf32, #tpu.memory_space<vmem>>, %arg4: memref<16x128xf32, #tpu.memory_space<vmem>>) attributes {dimension_semantics = [#tpu.dimension_semantics<parallel>], iteration_bounds = array<i64: 2>, scalar_prefetch = 0 : i64, scratch_operands = 0 : i64, tpu.core_type = #tpu.core_type<tc>, window_params = [{transform_indices = @transform_0, window_bounds = array<i64: 16, 128>}, {pipeline_mode = #tpu.pipeline_mode<synchronous>, transform_indices = @transform_1, window_bounds = array<i64: 512, 128>}, {pipeline_mode = #tpu.pipeline_mode<synchronous>, transform_indices = @transform_2, window_bounds = array<i64: 8, 128>}, {transform_indices = @transform_3, window_bounds = array<i64: 16, 128>}]} {
    %c0 = arith.constant 0 : index
    %c0_0 = arith.constant 0 : index
    %0 = vector.load %arg1[%c0, %c0_0] : memref<16x128xbf16, #tpu.memory_space<vmem>>, vector<16x128xbf16>
    %c0_1 = arith.constant 0 : index
    %c0_2 = arith.constant 0 : index
    %1 = vector.load %arg2[%c0_1, %c0_2] : memref<512x128xbf16, #tpu.memory_space<vmem>>, vector<128x128xbf16>
    %c0_3 = arith.constant 0 : index
    %c0_4 = arith.constant 0 : index
    %2 = vector.load %arg3[%c0_3, %c0_4] : memref<8x128xf32, #tpu.memory_space<vmem>>, vector<1x128xf32>
    %cst = arith.constant dense<0.000000e+00> : vector<16x128xf32>
    %3 = tpu.matmul %0, %1, %cst {dimension_numbers = #tpu.dot_dimension_numbers<[1], [0], [0], [1], [0, 0, 1, 1], [], []>} : vector<16x128xbf16>, vector<128x128xbf16>, vector<16x128xf32> -> vector<16x128xf32>
    %4 = vector.broadcast %2 : vector<1x128xf32> to vector<16x128xf32>
    %5 = arith.addf %3, %4 : vector<16x128xf32>
    %cst_5 = arith.constant 0.000000e+00 : f32
    %6 = vector.broadcast %cst_5 : f32 to vector<16x128xf32>
    %7 = arith.maximumf %5, %6 : vector<16x128xf32>
    %8 = arith.truncf %7 : vector<16x128xf32> to vector<16x128xbf16>
    %c128 = arith.constant 128 : index
    %c0_6 = arith.constant 0 : index
    %9 = vector.load %arg2[%c128, %c0_6] : memref<512x128xbf16, #tpu.memory_space<vmem>>, vector<128x128xbf16>
    %c1 = arith.constant 1 : index
    %c0_7 = arith.constant 0 : index
    %10 = vector.load %arg3[%c1, %c0_7] : memref<8x128xf32, #tpu.memory_space<vmem>>, vector<1x128xf32>
    %cst_8 = arith.constant dense<0.000000e+00> : vector<16x128xf32>
    %11 = tpu.matmul %8, %9, %cst_8 {dimension_numbers = #tpu.dot_dimension_numbers<[1], [0], [0], [1], [0, 0, 1, 1], [], []>} : vector<16x128xbf16>, vector<128x128xbf16>, vector<16x128xf32> -> vector<16x128xf32>
    %12 = vector.broadcast %10 : vector<1x128xf32> to vector<16x128xf32>
    %13 = arith.addf %11, %12 : vector<16x128xf32>
    %cst_9 = arith.constant 0.000000e+00 : f32
    %14 = vector.broadcast %cst_9 : f32 to vector<16x128xf32>
    %15 = arith.maximumf %13, %14 : vector<16x128xf32>
    %16 = arith.truncf %15 : vector<16x128xf32> to vector<16x128xbf16>
    %c256 = arith.constant 256 : index
    %c0_10 = arith.constant 0 : index
    %17 = vector.load %arg2[%c256, %c0_10] : memref<512x128xbf16, #tpu.memory_space<vmem>>, vector<128x128xbf16>
    %c2 = arith.constant 2 : index
    %c0_11 = arith.constant 0 : index
    %18 = vector.load %arg3[%c2, %c0_11] : memref<8x128xf32, #tpu.memory_space<vmem>>, vector<1x128xf32>
    %cst_12 = arith.constant dense<0.000000e+00> : vector<16x128xf32>
    %19 = tpu.matmul %16, %17, %cst_12 {dimension_numbers = #tpu.dot_dimension_numbers<[1], [0], [0], [1], [0, 0, 1, 1], [], []>} : vector<16x128xbf16>, vector<128x128xbf16>, vector<16x128xf32> -> vector<16x128xf32>
    %20 = vector.broadcast %18 : vector<1x128xf32> to vector<16x128xf32>
    %21 = arith.addf %19, %20 : vector<16x128xf32>
    %cst_13 = arith.constant 0.000000e+00 : f32
    %22 = vector.broadcast %cst_13 : f32 to vector<16x128xf32>
    %23 = arith.maximumf %21, %22 : vector<16x128xf32>
    %24 = arith.truncf %23 : vector<16x128xf32> to vector<16x128xbf16>
    %c384 = arith.constant 384 : index
    %c0_14 = arith.constant 0 : index
    %25 = vector.load %arg2[%c384, %c0_14] : memref<512x128xbf16, #tpu.memory_space<vmem>>, vector<128x128xbf16>
    %c3 = arith.constant 3 : index
    %c0_15 = arith.constant 0 : index
    %26 = vector.load %arg3[%c3, %c0_15] : memref<8x128xf32, #tpu.memory_space<vmem>>, vector<1x128xf32>
    %cst_16 = arith.constant dense<0.000000e+00> : vector<16x128xf32>
    %27 = tpu.matmul %24, %25, %cst_16 {dimension_numbers = #tpu.dot_dimension_numbers<[1], [0], [0], [1], [0, 0, 1, 1], [], []>} : vector<16x128xbf16>, vector<128x128xbf16>, vector<16x128xf32> -> vector<16x128xf32>
    %28 = vector.broadcast %26 : vector<1x128xf32> to vector<16x128xf32>
    %29 = arith.addf %27, %28 : vector<16x128xf32>
    %cst_17 = arith.constant 0.000000e+00 : f32
    %30 = vector.broadcast %cst_17 : f32 to vector<16x128xf32>
    %31 = arith.maximumf %29, %30 : vector<16x128xf32>
    %c0_18 = arith.constant 0 : index
    %c0_19 = arith.constant 0 : index
    %32 = vector.load %arg4[%c0_18, %c0_19] : memref<16x128xf32, #tpu.memory_space<vmem>>, vector<16x128xf32>
    tpu.vector_store %arg4[%c0_18, %c0_19], %31 {strides = array<i32>} : memref<16x128xf32, #tpu.memory_space<vmem>>, vector<16x128xf32>,
    return
  }
  func.func @transform_0(%arg0: i32) -> (i32, i32) {
    %c0_i32 = arith.constant 0 : i32
    %c0_i32_0 = arith.constant 0 : i32
    return %arg0, %c0_i32 : i32, i32
  }
  func.func @transform_1(%arg0: i32) -> (i32, i32) {
    %c0_i32 = arith.constant 0 : i32
    %c0_i32_0 = arith.constant 0 : i32
    %c0_i32_1 = arith.constant 0 : i32
    return %c0_i32, %c0_i32_0 : i32, i32
  }
  func.func @transform_2(%arg0: i32) -> (i32, i32) {
    %c0_i32 = arith.constant 0 : i32
    %c0_i32_0 = arith.constant 0 : i32
    %c0_i32_1 = arith.constant 0 : i32
    return %c0_i32, %c0_i32_0 : i32, i32
  }
  func.func @transform_3(%arg0: i32) -> (i32, i32) {
    %c0_i32 = arith.constant 0 : i32
    %c0_i32_0 = arith.constant 0 : i32
    return %arg0, %c0_i32 : i32, i32
  }
}

</mosaic_0001>

<bundles_post_ra>
// kernel: tpu_custom_call.1
= control target key start
LH: loop header
LB: loop body
LE: loop exit
PB: predicated region body
PF: predicated region fallthrough
CT: control target
= control target key end

     0   :  { %8 = vsyncpa [#allocation3], 0  ;;  %s1537_s0 = inlined_call_operand.hbm [shape: bf16[32,128], index: 0, kind: input, shape index: {}]   ;;  %s1538_s1 = inlined_call_operand.hbm [shape: bf16[512,128], index: 1, kind: input, shape index: {}]   ;;  %s1539_s2 = inlined_call_operand.hbm [shape: f32[8,128], index: 2, kind: input, shape index: {}]   ;;  %s1540_s3 = inlined_call_operand.hbm [shape: f32[32,128], index: 3, kind: output, shape index: {}]  }
   0x1   :  { %10 = vsyncpa [#allocation3 + $0x1], 0 }
   0x2   :  { %11 = vsyncpa [#allocation6], 0 }
   0x3   :  { %12 = vsyncpa [#allocation4], 0 }
   0x4   :  { %14 = vsyncpa [#allocation4 + $0x1], 0  ;;  %s1253_s12 = smov 0   ;;  %s1255_s13 = smov 0  }
   0x5   :  { %s1257_s14 = smov 0   ;;  %s1259_s15 = smov 0  }
   0x6 LB: > { %s1274_s16 = sadd.s32 4294967295, %s1221_s15   ;;  %s786_s17 = sadd.s32 4294967294, %s1221_s15   ;;  %s1221_s15 = sphi %s1259_s15, %s1560_s15   ;;  %s1217_s14 = sphi %s1257_s14, %s1559_s14   ;;  %s1213_s13 = sphi %s1255_s13, %s1558_s13   ;;  %s1209_s12 = sphi %s1253_s12, %s1557_s12  }
   0x7   : > { %p40_p0 = scmp.ne.s32.totalorder %s1213_s13, %s1209_s12  ;;  %p1541_p1 = scmp.eq.s32.totalorder %s1274_s16, 0 }
   0x8   : > { %p112_p3 = scmp.eq.s32.totalorder %s786_s17, 1  ;;  %p787_p5 = scmp.ge.s32.totalorder %s1221_s15, 1 }
   0x9   : > { %p1283_p4 = por %p1541_p1, %p40_p0  ;;  %p119_p7 = scmp.lt.s32.totalorder %s1221_s15, 3 }
   0xa   : > { %p1288_p6 = por %p112_p3, %p40_p0  ;;  %s1223_s21 = smov [#allocation5]  }
   0xb   : > { %s1544_s18 = scalar_select %p1283_p4, 1, 0 }
   0xc   : > { %s1545_s19 = scalar_select %p1288_p6, 1, 0 }
   0xd   : > { %p1293_p8 = pnand %p787_p5, %p119_p7  ;;  %s131_s22 = sshll.u32 %s1223_s21, 4  ;;  %s1297_s22 = int_to_ptr.vmem [resolvable:$true] %s131_s22 }
   0xe   : > { %s1224_s24 = smov [#allocation7]   ;;  %s1065_s28 = scalar_lea.hbm %s1538_s1, 4096 }
   0xf   : > { %p971_p9 = pneg %p1293_p8  ;;  %s145_s25 = sshll.u32 %s1224_s24, 4  ;;  %s1308_s25 = int_to_ptr.vmem [resolvable:$true] %s145_s25 }
  0x10   : > { %p1066_p12 = scmp.ne.s32.totalorder %s1538_s1, %s1065_s28  ;;  %p1072_p5 = scmp.lt.u32.totalorder %s1065_s28, %s1538_s1 }
  0x11   : > { %p1304_p11 = pnand %p971_p9, %p1541_p1 }
  0x13   : > { %p1067_p13 = pneg %p1304_p11 }
  0x15   : > { %p1068_p0 = pnand %p1067_p13, %p1066_p12 }
  0x17   : > { %p1069_p3 = pneg %p1068_p0 }
  0x19   : > { %p1074_p7 = pnand %p1072_p5, %p1069_p3 }
  0x1b   : > { %1077 = shalt.err (!%p1074_p7)
}
  0x1c   : > { %s1078_s6 = scalar_lea.vmem %s1297_s22, 4096  ;;  %p1086_p2 = scmp.lt.s32.totalorder %s1297_s22, %s1297_s22 }
  0x1d   : > { %p1079_p9 = scmp.ne.s32.totalorder %s1297_s22, %s1078_s6  ;;  %p1087_p12 = scmp.lt.s32.totalorder %s1078_s6, %s1078_s6 }
  0x1f   : > { %p1081_p10 = pnand %p1079_p9, %p1067_p13  ;;  %p1088_p0 = por %p1087_p12, %p1086_p2 }
  0x21   : > { %p1082_p1 = pneg %p1081_p10 }
  0x23   : > { %p1089_p6 = pnand %p1088_p0, %p1082_p1 }
  0x25   : > { %1092 = shalt.err (!%p1089_p6)
}
  0x26   : > { %s1225_s7 = smov 64   ;;  %s1226_s8 = smov 4  }
  0x27   : > { %974 = dma.hbm_to_vmem [thread:$0]  (!%p1304_p11), %s1538_s1, 4096, %s1297_s22, [#allocation6], %s1225_s7, %s1225_s7, %s1226_s8  }
  0x28   : > { %s1093_s21 = scalar_lea.hbm %s1539_s2, 128 }
  0x29   : > { %p1094_p1 = scmp.ne.s32.totalorder %s1539_s2, %s1093_s21  ;;  %p1100_p10 = scmp.lt.u32.totalorder %s1093_s21, %s1539_s2 }
  0x2b   : > { %p1096_p2 = pnand %p1094_p1, %p1067_p13 }
  0x2d   : > { %p1097_p6 = pneg %p1096_p2 }
  0x2f   : > { %p1102_p3 = pnand %p1100_p10, %p1097_p6 }
  0x31   : > { %1105 = shalt.err (!%p1102_p3)
}
  0x32   : > { %s1106_s22 = scalar_lea.vmem %s1308_s25, 128  ;;  %p1114_p12 = scmp.lt.s32.totalorder %s1308_s25, %s1308_s25 }
  0x33   : > { %p1107_p5 = scmp.ne.s32.totalorder %s1308_s25, %s1106_s22  ;;  %p1115_p0 = scmp.lt.s32.totalorder %s1106_s22, %s1106_s22 }
  0x35   : > { %p1109_p7 = pnand %p1107_p5, %p1067_p13  ;;  %p1116_p1 = por %p1115_p0, %p1114_p12 }
  0x37   : > { %p1110_p9 = pneg %p1109_p7 }
  0x39   : > { %p1117_p2 = pnand %p1116_p1, %p1110_p9 }
  0x3b   : > { %1120 = shalt.err (!%p1117_p2)
}
  0x3c   : > { %977 = dma.hbm_to_vmem [thread:$0]  (!%p1304_p11), %s1539_s2, 128, %s1308_s25, [#allocation6]  }
  0x3d   : > { %s1366_s4 = sadd.s32 1, %s1221_s15   ;;  %s27_s23 = sadd.s32 1, %s1217_s14 }
  0x3e   : > { %s24_s5 = ssub.s32 %s1221_s15, %s1366_s4  ;;  %p34_p13 = scmp.ne.s32.totalorder %s1217_s14, %s1213_s13 }
  0x3f   : > { %p25_p6 = scmp.eq.s32.totalorder %s24_s5, 0  ;;  %p35_p10 = scmp.eq.s32.totalorder %s1221_s15, 0 }
  0x40   : > { %p1548_p3 = scmp.eq.s32.totalorder %s1274_s16, 1  ;;  %p988_p7 = scmp.lt.s32.totalorder %s1221_s15, 2 }
  0x41   : > { %s1382_s9 = scalar_select %p25_p6, %s1217_s14, %s27_s23  }
  0x42   : > { %p1376_p5 = por %p1548_p3, %p34_p13  ;;  %p36_p9 = por %p35_p10, %p34_p13 }
  0x43   : > { %s156_s10 = sand.u32 1, %s1217_s14   ;;  %s841_s25 = sshll.u32 %s1221_s15, 7 }
  0x44   : > { %s1549_s6 = scalar_select %p1376_p5, 1, 0 }
  0x45   : > { %s791_s11 = sshll.u32 %s156_s10, 3  ;;  %s1389_s24 = scalar_lea.hbm %s1537_s0, %s841_s25 }
  0x46   : > { %s160_s26 = scalar_lea.vmem [#allocation2], %s791_s11  ;;  %p1393_p11 = pnand %p988_p7, %p36_p9 }
  0x47   : > { %s167_s27 = sshll.u32 %s160_s26, 4  ;;  %s1397_s22 = scalar_lea.sflag [#allocation3], %s156_s10  ;;  %s1391_s27 = int_to_ptr.vmem [resolvable:$true] %s167_s27 }
  0x48   : > { %s1121_s29 = scalar_lea.hbm %s1389_s24, 128  ;;  %p1123_p0 = pneg %p1393_p11 }
  0x49   : > { %p1122_p12 = scmp.ne.s32.totalorder %s1389_s24, %s1121_s29  ;;  %s1126_s5 = scalar_lea.hbm %s1537_s0, 256 }
  0x4a   : > { %p1127_p13 = scmp.lt.u32.totalorder %s1389_s24, %s1537_s0  ;;  %p1128_p6 = scmp.lt.u32.totalorder %s1126_s5, %s1121_s29 }
  0x4b   : > { %p1124_p1 = pnand %p1123_p0, %p1122_p12  ;;  %p1130_p3 = scmp.lt.u32.totalorder %s1121_s29, %s1389_s24 }
  0x4c   : > { %p1129_p10 = por %p1128_p6, %p1127_p13 }
  0x4d   : > { %p1125_p2 = pneg %p1124_p1 }
  0x4e   : > { %p1131_p7 = por %p1130_p3, %p1129_p10 }
  0x50   : > { %p1132_p9 = pnand %p1131_p7, %p1125_p2 }
  0x52   : > { %1135 = shalt.err (!%p1132_p9)
}
  0x53   : > { %s1136_s10 = scalar_lea.vmem %s1391_s27, 128  ;;  %s1227_s17 = smov [#allocation2]  }
  0x54   : > { %p1137_p12 = scmp.ne.s32.totalorder %s1391_s27, %s1136_s10  ;;  %s1141_s21 = sshll.u32 %s1227_s17, 4  ;;  %s1142_s21 = int_to_ptr.vmem [resolvable:$false] %s1141_s21 }
  0x55   : > { %s1143_s26 = scalar_lea.vmem %s1142_s21, 256  ;;  %p1144_p4 = scmp.lt.s32.totalorder %s1391_s27, %s1142_s21 }
  0x56   : > { %p1139_p1 = pnand %p1137_p12, %p1123_p0  ;;  %p1145_p13 = scmp.lt.s32.totalorder %s1143_s26, %s1136_s10 }
  0x58   : > { %p1140_p5 = pneg %p1139_p1  ;;  %p1146_p6 = por %p1145_p13, %p1144_p4 }
  0x5a   : > { %p1147_p10 = pnand %p1146_p6, %p1140_p5 }
  0x5c   : > { %1150 = shalt.err (!%p1147_p10)
}
  0x5d   : > { %981 = dma.hbm_to_vmem [thread:$0]  (!%p1393_p11), %s1389_s24, 128, %s1391_s27, %s1397_s22, %s1225_s7, %s1225_s7, %s1226_s8  }
  0x5e   : > { %179 = sbr.rel (%p1293_p8) target bundleno = 1032 (0x408), region = 32  ;;  %s1431_s29 = sand.u32 (!%p1293_p8), 1, %s1213_s13  }
  0x5f   : > { %s795_s30 = sshll.u32 (!%p1293_p8), %s1431_s29, 3  ;;  %s182_s23 = scalar_lea.sflag (!%p1293_p8), [#allocation3], %s1431_s29 }
  0x60   : > { %s1435_s5 = scalar_lea.vmem (!%p1293_p8), [#allocation2], %s795_s30  ;;  %p1551_p4 = scmp.ne.s32.totalorder (!%p1293_p8), %s1544_s18, 0 }
  0x65   : > { %1196 = dma.done.wait (%p1551_p4), %s182_s23, 128  }
  0x66   : > { %1198 = vsyncadd (%p1551_p4), %s182_s23, 4294967168  ;;  %p1552_p5 = scmp.eq.s32.totalorder %s1274_s16, 0 }
  0x68   : > { %1200 = dma.done.wait (%p1552_p5), [#allocation6], 4224   ;;  %p1553_p8 = pmov %p1552_p5 }
  0x69   : > { %v1228_v0 = vmov 0.0   ;;  %vm1229_vm0 = vmmov 0   ;;  %v1032_v1 = vld [vmem:[#allocation5] sm:$0xff]   ;;  %v1033_v2 = vld [vmem:[#allocation5 + $0x8] sm:$0xff]   ;;  %v1034_v3 = vld [vmem:[#allocation5 + $0x10] sm:$0xff]   ;;  %s798_s18 = sshll.u32 %s1431_s29, 4 }
  0x6a   : > { %1202 = vsyncadd (%p1553_p8), [#allocation6], 4294963072  ;;  %879 = vmatprep.subr.bf16.mxu0 %v1228_v0  ;;  %895 = vmatprep.mubr.msk.bf16.mxu0 %vm1229_vm0, %v1228_v0  ;;  %v1041_v4 = vld [vmem:[#allocation5 + $0x40] sm:$0xff]   ;;  %v1035_v5 = vld [vmem:[#allocation5 + $0x18] sm:$0xff]   ;;  %s215_s20 = scalar_lea.vmem [#allocation8], %s798_s18  ;;  %s842_s8 = sshll.u32 %s1274_s16, 8 }
  0x6b   : > { %899 = vmatprep.subr.bf16.mxu1 %v1228_v0  ;;  %915 = vmatprep.mubr.msk.bf16.mxu1 %vm1229_vm0, %v1228_v0  ;;  %v1042_v6 = vld [vmem:[#allocation5 + $0x48] sm:$0xff]   ;;  %v1036_v7 = vld [vmem:[#allocation5 + $0x20] sm:$0xff]   ;;  %v1043_v8 = vld [vmem:[#allocation5 + $0x50] sm:$0xff]   ;;  %s694_s7 = sshll.u32 %s215_s20, 4  ;;  %s1493_s28 = scalar_lea.hbm %s1540_s3, %s842_s8  ;;  %s1488_s7 = int_to_ptr.vmem [resolvable:$true] %s694_s7 }
  0x6c   : > { %880 = vmatpush3.bf16.msra.mxu0 %v1032_v1  ;;  %900 = vmatpush3.bf16.msra.mxu1 %v1041_v4  ;;  %v1037_v9 = vld [vmem:[#allocation5 + $0x28] sm:$0xff]   ;;  %v1044_v10 = vld [vmem:[#allocation5 + $0x58] sm:$0xff]   ;;  %v1038_v11 = vld [vmem:[#allocation5 + $0x30] sm:$0xff]   ;;  %s681_s22 = scalar_lea.sflag [#allocation4], %s1431_s29  ;;  %s1151_s11 = scalar_lea.vmem %s1488_s7, 256 }
  0x6d   : > { %881 = vmatprep.subr.bf16.mxu0 %v1228_v0  ;;  %901 = vmatprep.subr.bf16.mxu1 %v1228_v0  ;;  %v1045_v12 = vld [vmem:[#allocation5 + $0x60] sm:$0xff]   ;;  %v1039_v13 = vld [vmem:[#allocation5 + $0x38] sm:$0xff]   ;;  %v1046_v14 = vld [vmem:[#allocation5 + $0x68] sm:$0xff]   ;;  %p1152_p11 = scmp.ne.s32.totalorder %s1488_s7, %s1151_s11  ;;  %p1554_p0 = scmp.ne.s32.totalorder %s1549_s6, 0 }
  0x6e   : > { %v1040_v15 = vld [vmem:[%s1435_s5] sm:$0xff]   ;;  %v1049_v18 = vld [vmem:[#allocation5 + $0x80] sm:$0xff]   ;;  %v1050_v19 = vld [vmem:[#allocation5 + $0x88] sm:$0xff]   ;;  %s1230_s16 = smov [#allocation8]  }
  0x6f   : > { %v1047_v16 = vld [vmem:[#allocation5 + $0x70] sm:$0xff]   ;;  %v1048_v17 = vld [vmem:[#allocation5 + $0x78] sm:$0xff]   ;;  %v1053_v22 = vld [vmem:[#allocation5 + $0xa0] sm:$0xff]   ;;  %p1153_p2 = pnand %p1152_p11, %p1554_p0  ;;  %s1155_s25 = sshll.u32 %s1230_s16, 4  ;;  %s1156_s25 = int_to_ptr.vmem [resolvable:$false] %s1155_s25 }
  0x70   : > { %882 = vmatpush3.bf16.msra.mxu0 %v1033_v2  ;;  %902 = vmatpush3.bf16.msra.mxu1 %v1042_v6  ;;  %v1051_v20 = vld [vmem:[#allocation5 + $0x90] sm:$0xff]   ;;  %v1052_v21 = vld [vmem:[#allocation5 + $0x98] sm:$0xff]   ;;  %v1054_v23 = vld [vmem:[#allocation5 + $0xa8] sm:$0xff]   ;;  %s1157_s10 = scalar_lea.vmem %s1156_s25, 512  ;;  %p1158_p7 = scmp.lt.s32.totalorder %s1488_s7, %s1156_s25 }
  0x71   : > { %883 = vmatprep.subr.bf16.mxu0 %v1228_v0  ;;  %903 = vmatprep.subr.bf16.mxu1 %v1228_v0  ;;  %v799_v24 = vld [vmem:[#allocation7] ss:$0 sm:$0xff]  ;;  %v1055_v34 = vld [vmem:[#allocation5 + $0xb0] sm:$0xff]   ;;  %v1056_v35 = vld [vmem:[#allocation5 + $0xb8] sm:$0xff]   ;;  %p1154_p3 = pneg %p1153_p2  ;;  %p1159_p9 = scmp.lt.s32.totalorder %s1157_s10, %s1151_s11 }
  0x72   : > { %v1057_v36 = vld [vmem:[#allocation5 + $0xc0] sm:$0xff]   ;;  %v1058_v37 = vld [vmem:[#allocation5 + $0xc8] sm:$0xff]   ;;  %v1059_v38 = vld [vmem:[#allocation5 + $0xd0] sm:$0xff]  }
  0x73   : > { %v1060_v39 = vld [vmem:[#allocation5 + $0xd8] sm:$0xff]   ;;  %v1061_v40 = vld [vmem:[#allocation5 + $0xe0] sm:$0xff]   ;;  %v1062_v41 = vld [vmem:[#allocation5 + $0xe8] sm:$0xff]   ;;  %p1160_p12 = por %p1159_p9, %p1158_p7 }
  0x74   : > { %884 = vmatpush3.bf16.msra.mxu0 %v1034_v3  ;;  %904 = vmatpush3.bf16.msra.mxu1 %v1043_v8  ;;  %v809_v42 = vld [vmem:[#allocation7 + $0x1] ss:$0 sm:$0xff]  ;;  %v1063_v52 = vld [vmem:[#allocation5 + $0xf0] sm:$0xff]   ;;  %v1064_v53 = vld [vmem:[#allocation5 + $0xf8] sm:$0xff]  }
  0x75   : > { %885 = vmatprep.subr.bf16.mxu0 %v1228_v0  ;;  %905 = vmatprep.subr.bf16.mxu1 %v1228_v0  ;;  %v818_v54 = vld [vmem:[#allocation7 + $0x2] ss:$0 sm:$0xff]  ;;  %v827_v1 = vld [vmem:[#allocation7 + $0x3] ss:$0 sm:$0xff]  ;;  %p1161_p1 = pnand %p1160_p12, %p1154_p3 }
  0x78   : > { %886 = vmatpush3.bf16.msra.mxu0 %v1035_v5  ;;  %906 = vmatpush3.bf16.msra.mxu1 %v1044_v10 }
  0x79   : > { %887 = vmatprep.subr.bf16.mxu0 %v1228_v0  ;;  %907 = vmatprep.subr.bf16.mxu1 %v1228_v0 }
  0x7c   : > { %888 = vmatpush3.bf16.msra.mxu0 %v1036_v7  ;;  %908 = vmatpush3.bf16.msra.mxu1 %v1045_v12 }
  0x7d   : > { %889 = vmatprep.subr.bf16.mxu0 %v1228_v0  ;;  %909 = vmatprep.subr.bf16.mxu1 %v1228_v0 }
  0x80   : > { %890 = vmatpush3.bf16.msra.mxu0 %v1037_v9  ;;  %910 = vmatpush3.bf16.msra.mxu1 %v1046_v14 }
  0x81   : > { %891 = vmatprep.subr.bf16.mxu0 %v1228_v0  ;;  %911 = vmatprep.subr.bf16.mxu1 %v1228_v0 }
  0x84   : > { %892 = vmatpush3.bf16.msra.mxu0 %v1038_v11  ;;  %912 = vmatpush3.bf16.msra.mxu1 %v1047_v16 }
  0x85   : > { %893 = vmatprep.subr.bf16.mxu0 %v1228_v0  ;;  %913 = vmatprep.subr.bf16.mxu1 %v1228_v0 }
  0x88   : > { %894 = vmatpush3.bf16.msra.mxu0 %v1039_v13  ;;  %914 = vmatpush3.bf16.msra.mxu1 %v1048_v17 }
  0x89   : > { %919 = vmatprep.subr.bf16.mxu0 %v1228_v0  ;;  %939 = vmatprep.subr.bf16.mxu1 %v1228_v0 }
  0x8b   : > { %896 = vmatmul.mubr.bf16.vlgmr.msra.gmra.mrb[0].mxu0 %v1040_v15 }
  0x8c   : > { %935 = vmatprep.mubr.msk.bf16.mxu0 %vm1229_vm0, %v1228_v0  ;;  %920 = vmatpush3.bf16.msra.mxu0 %v1049_v18 }
  0x8d   : > { %921 = vmatprep.subr.bf16.mxu0 %v1228_v0 }
  0x90   : > { %922 = vmatpush3.bf16.msra.mxu0 %v1050_v19 }
  0x91   : > { %923 = vmatprep.subr.bf16.mxu0 %v1228_v0 }
  0x94   : > { %924 = vmatpush3.bf16.msra.mxu0 %v1051_v20 }
  0x95   : > { %925 = vmatprep.subr.bf16.mxu0 %v1228_v0 }
  0x98   : > { %926 = vmatpush3.bf16.msra.mxu0 %v1052_v21 }
  0x99   : > { %927 = vmatprep.subr.bf16.mxu0 %v1228_v0 }
  0x9c   : > { %928 = vmatpush3.bf16.msra.mxu0 %v1053_v22 }
  0x9d   : > { %929 = vmatprep.subr.bf16.mxu0 %v1228_v0 }
  0xa0   : > { %930 = vmatpush3.bf16.msra.mxu0 %v1054_v23 }
  0xa1   : > { %931 = vmatprep.subr.bf16.mxu0 %v1228_v0 }
  0xa4   : > { %932 = vmatpush3.bf16.msra.mxu0 %v1055_v34 }
  0xa5   : > { %933 = vmatprep.subr.bf16.mxu0 %v1228_v0 }
  0xa8   : > { %934 = vmatpush3.bf16.msra.mxu0 %v1056_v35 }
 0x15e   : > { %v330_v25 = vpop.f32.mrb[0].mxu0 }
 0x15f   : > { %v331_v26 = vadd.f32 %v799_v24, %v330_v25  ;;  %v897_v27 = vpop.f32.mrb[1].mxu0 }
 0x160   : > { %v333_v28 = vpop.f32.mrb[2].mxu0 }
 0x161   : > { %v334_v29 = vadd.f32 %v799_v24, %v333_v28  ;;  %v898_v30 = vpop.f32.mrb[3].mxu0  ;;  %v337_v31 = vmax.f32 %v331_v26, 0.0 }
 0x163   : > { %v338_v32 = vmax.f32 %v334_v29, 0.0 }
 0x165   : > { %v339_v33 = vpack.c.bf16 %v338_v32, %v337_v31 }
 0x167   : > { %916 = vmatmul.mubr.bf16.vlgmr.msra.gmra.mrb[0].mxu1 %v339_v33 }
 0x168   : > { %955 = vmatprep.mubr.msk.bf16.mxu1 %vm1229_vm0, %v1228_v0  ;;  %940 = vmatpush3.bf16.msra.mxu1 %v1057_v36 }
 0x169   : > { %941 = vmatprep.subr.bf16.mxu1 %v1228_v0 }
 0x16c   : > { %942 = vmatpush3.bf16.msra.mxu1 %v1058_v37 }
 0x16d   : > { %943 = vmatprep.subr.bf16.mxu1 %v1228_v0 }
 0x170   : > { %944 = vmatpush3.bf16.msra.mxu1 %v1059_v38 }
 0x171   : > { %945 = vmatprep.subr.bf16.mxu1 %v1228_v0 }
 0x174   : > { %946 = vmatpush3.bf16.msra.mxu1 %v1060_v39 }
 0x175   : > { %947 = vmatprep.subr.bf16.mxu1 %v1228_v0 }
 0x178   : > { %948 = vmatpush3.bf16.msra.mxu1 %v1061_v40 }
 0x179   : > { %949 = vmatprep.subr.bf16.mxu1 %v1228_v0 }
 0x17c   : > { %950 = vmatpush3.bf16.msra.mxu1 %v1062_v41 }
 0x17d   : > { %951 = vmatprep.subr.bf16.mxu1 %v1228_v0 }
 0x180   : > { %952 = vmatpush3.bf16.msra.mxu1 %v1063_v52 }
 0x181   : > { %953 = vmatprep.subr.bf16.mxu1 %v1228_v0 }
 0x184   : > { %954 = vmatpush3.bf16.msra.mxu1 %v1064_v53 }
 0x23a   : > { %v443_v43 = vpop.f32.mrb[0].mxu1 }
 0x23b   : > { %v444_v44 = vadd.f32 %v809_v42, %v443_v43  ;;  %v917_v45 = vpop.f32.mrb[1].mxu1 }
 0x23c   : > { %v446_v46 = vpop.f32.mrb[2].mxu1 }
 0x23d   : > { %v447_v47 = vadd.f32 %v809_v42, %v446_v46  ;;  %v918_v48 = vpop.f32.mrb[3].mxu1  ;;  %v450_v49 = vmax.f32 %v444_v44, 0.0 }
 0x23f   : > { %v451_v50 = vmax.f32 %v447_v47, 0.0 }
 0x241   : > { %v452_v51 = vpack.c.bf16 %v451_v50, %v450_v49 }
 0x243   : > { %936 = vmatmul.mubr.bf16.vlgmr.msra.gmra.mrb[4].mxu0 %v452_v51 }
 0x316   : > { %v556_v55 = vpop.f32.mrb[4].mxu0 }
 0x317   : > { %v557_v56 = vadd.f32 %v818_v54, %v556_v55  ;;  %v937_v57 = vpop.f32.mrb[5].mxu0 }
 0x318   : > { %v559_v58 = vpop.f32.mrb[6].mxu0 }
 0x319   : > { %v560_v59 = vadd.f32 %v818_v54, %v559_v58  ;;  %v938_v60 = vpop.f32.mrb[7].mxu0  ;;  %v563_v61 = vmax.f32 %v557_v56, 0.0 }
 0x31b   : > { %v564_v62 = vmax.f32 %v560_v59, 0.0 }
 0x31d   : > { %v565_v63 = vpack.c.bf16 %v564_v62, %v563_v61 }
 0x31f   : > { %956 = vmatmul.mubr.bf16.vlgmr.msra.gmra.mrb[4].mxu1 %v565_v63 }
 0x3f2   : > { %v669_v2 = vpop.f32.mrb[4].mxu1 }
 0x3f3   : > { %v670_v0 = vadd.f32 %v827_v1, %v669_v2  ;;  %v957_v3 = vpop.f32.mrb[5].mxu1 }
 0x3f4   : > { %v672_v4 = vpop.f32.mrb[6].mxu1 }
 0x3f5   : > { %v676_v5 = vmax.f32 %v670_v0, 0.0  ;;  %v673_v6 = vadd.f32 %v827_v1, %v672_v4  ;;  %v958_v7 = vpop.f32.mrb[7].mxu1 }
 0x3f7   : > { %678 = vst [vmem:[%s215_s20] sm:$0xff] %v676_v5  ;;  %v677_v8 = vmax.f32 %v673_v6, 0.0 }
 0x3f9   : > { %679 = vst [vmem:[%s215_s20 + $0x8] sm:$0xff] %v677_v8 }
 0x3fa   : > { %1164 = shalt.err (!%p1161_p1)
}
 0x3fb   : > { %s1165_s17 = scalar_lea.hbm %s1493_s28, 256  ;;  %s1169_s30 = scalar_lea.hbm %s1540_s3, 512 }
 0x3fc   : > { %p1166_p13 = scmp.ne.s32.totalorder %s1493_s28, %s1165_s17  ;;  %p1170_p4 = scmp.lt.u32.totalorder %s1493_s28, %s1540_s3 }
 0x3fd   : > { %p1171_p5 = scmp.lt.u32.totalorder %s1169_s30, %s1165_s17  ;;  %p1173_p11 = scmp.lt.u32.totalorder %s1165_s17, %s1493_s28 }
 0x3fe   : > { %p1167_p6 = pnand %p1166_p13, %p1554_p0 }
 0x3ff   : > { %p1172_p8 = por %p1171_p5, %p1170_p4 }
 0x400   : > { %p1168_p10 = pneg %p1167_p6 }
 0x401   : > { %p1174_p2 = por %p1173_p11, %p1172_p8 }
 0x403   : > { %p1175_p3 = pnand %p1174_p2, %p1168_p10 }
 0x405   : > { %1178 = shalt.err (!%p1175_p3)
}
 0x406   : > { %s1231_s18 = smov 128   ;;  %s1232_s20 = smov 8  }
 0x407   : > { %969 = dma.vmem_to_hbm [thread:$0]  (%p1554_p0), %s1488_s7, 256, %s1493_s28, %s681_s22, %s1231_s18, %s1231_s18, %s1232_s20  }
 0x408 PF: > { %s709_s8 = sand.u32 1, %s1209_s12   ;;  %p1555_p7 = scmp.ne.s32.totalorder %s1545_s19, 0 }
 0x409   : > { %p1556_p9 = scmp.ge.s32.totalorder %s1221_s15, 2  ;;  %s710_s24 = scalar_lea.sflag [#allocation4], %s709_s8 }
 0x40b   : > { %p983_p12 = pnand %p1556_p9, %p1555_p7 }
 0x40d   : > { %1204 = dma.done.wait (!%p983_p12), %s710_s24, 256  }
 0x40e   : > { %1206 = vsyncadd (!%p983_p12), %s710_s24, 4294967040  ;;  %p17_p1 = scmp.ge.s32.totalorder %s1366_s4, 4   ;;  %s1557_s12 = smov %s1213_s13 }
 0x40f   : > { %s1558_s13 = smov %s1217_s14  ;;  %s1559_s14 = smov %s1382_s9 }
 0x410   : > { %s1560_s15 = smov %s1366_s4  ;;  %19 = sbr.rel (!%p17_p1) target bundleno = 6 (0x6), region = 85 }
 0x417   :  { %715 = vsyncpa [#allocation3], 1 }
 0x418   :  { %717 = vsyncpa [#allocation3 + $0x1], 1 }
 0x419   :  { %718 = vsyncpa [#allocation6], 1 }
 0x41a   :  { %719 = vsyncpa [#allocation4], 1 }
 0x41b   :  { %721 = vsyncpa [#allocation4 + $0x1], 1 }

</bundles_post_ra>
